<compile_context>
chip_gen: v5e
topology: v5e:2x2
jax: 0.10.0
libtpu: 0.0.40
codegen_flags: <defaults>
</compile_context>

<pallas_src>
import functools
import math

import jax
import jax.numpy as jnp
from jax.experimental import pallas as pl
from jax.experimental.pallas import tpu as pltpu


def _round_up(x, m):
    return ((x + m - 1) // m) * m


def _rnn_cell_kernel(x_ref, h_ref, wih_ref, whh_ref, b_ref, o_ref, *, compute_dtype):
    """Fused h' = tanh(x @ Wih_t + h @ Whh_t + b) on one (tile_m, .) row tile.

    Weights arrive already in `compute_dtype` (cast once at init); only the small
    per-tile activation blocks are cast here.  Both matmuls accumulate in f32 on the
    MXU; bias add and tanh stay in f32.
    """
    x = x_ref[...].astype(compute_dtype)
    h = h_ref[...].astype(compute_dtype)
    pre = (
        jnp.dot(x, wih_ref[...], preferred_element_type=jnp.float32)
        + jnp.dot(h, whh_ref[...], preferred_element_type=jnp.float32)
        + b_ref[...]  # (1, H_p) f32, VMEM-resident, broadcasts over rows
    )
    o_ref[...] = jnp.tanh(pre).astype(o_ref.dtype)


def rnn_cell_pallas(x, h, wih_p, whh_p, bias_p, *, max_tile_m=1024, out_dtype=None):
    """x: (M, K), h: (M, H); wih_p: (K, H_p), whh_p: (H, H_p) [pre-padded/pre-cast],
    bias_p: (1, H_p) f32.  Returns tanh(x @ Wih + h @ Whh + b) with shape (M, H)."""
    M, K = x.shape
    Mh, H = h.shape
    assert Mh == M
    Kw, H_p = wih_p.shape
    assert Kw == K and whh_p.shape == (H, H_p) and bias_p.shape == (1, H_p)

    out_dtype = x.dtype if out_dtype is None else out_dtype
    compute_dtype = wih_p.dtype

    # Row tile: multiple of 8, <= max_tile_m, and small enough that the row grid has at
    # least 2 steps when M allows (v7x two-TensorCore split + double-buffered pipeline).
    tile_m = min(max_tile_m, max(8, _round_up(pl.cdiv(M, 2), 8)))
    grid_m = pl.cdiv(M, tile_m)  # ragged last tile handled by Pallas (masked writeback)

    # Derive the VMEM limit from the actual block footprint (everything double-buffered
    # by Pallas) instead of a hard-coded constant; respect the chip's capacity when the
    # hardware is queryable (v7x has only 64 MiB per core).
    def nbytes(shape, dtype):
        return math.prod(shape) * jnp.dtype(dtype).itemsize

    block_bytes = 2 * (
        nbytes((tile_m, K), x.dtype)
        + nbytes((tile_m, H), h.dtype)
        + nbytes((tile_m, H_p), out_dtype)
        + nbytes((K, H_p), compute_dtype)
        + nbytes((H, H_p), compute_dtype)
        + nbytes((1, H_p), bias_p.dtype)
    )
    try:
        vmem_cap = int(pltpu.get_tpu_info().vmem_capacity_bytes)
    except Exception:
        vmem_cap = 64 * 1024 * 1024  # conservative: v7x per-TensorCore VMEM
    vmem_limit = int(min(max(32 * 1024 * 1024, 2 * block_bytes), (3 * vmem_cap) // 4))

    out = pl.pallas_call(
        functools.partial(_rnn_cell_kernel, compute_dtype=compute_dtype),
        out_shape=jax.ShapeDtypeStruct((M, H_p), out_dtype),
        grid=(grid_m,),
        in_specs=[
            pl.BlockSpec((tile_m, K), lambda i: (i, 0)),    # x rows: tiled over grid
            pl.BlockSpec((tile_m, H), lambda i: (i, 0)),    # h rows: tiled over grid
            pl.BlockSpec((K, H_p), lambda i: (0, 0)),       # W_ih^T: VMEM-resident
            pl.BlockSpec((H, H_p), lambda i: (0, 0)),       # W_hh^T: VMEM-resident
            pl.BlockSpec((1, H_p), lambda i: (0, 0)),       # combined bias: resident
        ],
        out_specs=pl.BlockSpec((tile_m, H_p), lambda i: (i, 0)),
        compiler_params=pltpu.CompilerParams(
            dimension_semantics=("parallel",),  # row tiles are independent -> megacore
            vmem_limit_bytes=vmem_limit,
        ),
    )(x, h, wih_p, whh_p, bias_p)

    # Only the padded output columns need trimming (zero when H is already 128/256-aligned).
    return out if H_p == H else out[:, :H]


def init_rnn_cell_params(key, input_size, hidden_size):
    """Replicates nn.RNNCell init (uniform(-1/sqrt(H), 1/sqrt(H))) with biases zeroed,
    as done in the module's __init__.  Weights stored pre-transposed: (in, out)."""
    bound = 1.0 / math.sqrt(hidden_size)
    k_ih, k_hh = jax.random.split(key)
    w_ih_t = jax.random.uniform(
        k_ih, (input_size, hidden_size), jnp.float32, minval=-bound, maxval=bound)
    w_hh_t = jax.random.uniform(
        k_hh, (hidden_size, hidden_size), jnp.float32, minval=-bound, maxval=bound)
    b_ih = jnp.zeros((hidden_size,), jnp.float32)   # nn.init.zeros_
    b_hh = jnp.zeros((hidden_size,), jnp.float32)   # nn.init.zeros_
    return {"w_ih_t": w_ih_t, "w_hh_t": w_hh_t, "b_ih": b_ih, "b_hh": b_hh}


def prepare_rnn_cell_params(params, *, compute_dtype=jnp.bfloat16, feature_align=None):
    """One-time, amortized weight prep (do NOT call per timestep):
      * pad the weight output dim to a lane-dense multiple (256 when H allows, else 128),
      * pre-sum the two biases into a single (1, H_p) f32 vector,
      * pre-cast the weights to the MXU compute dtype (bf16 default; f32 for parity).
    """
    w_ih_t, w_hh_t = params["w_ih_t"], params["w_hh_t"]
    K, H = w_ih_t.shape
    assert w_hh_t.shape == (H, H)
    if feature_align is None:
        # 256-wide output tiles better fill the 2x256x256 MXUs on v6e/v7x when H allows.
        feature_align = 256 if H >= 256 else 128
    H_p = _round_up(H, feature_align)
    wih_p = jnp.pad(w_ih_t, ((0, 0), (0, H_p - H))).astype(compute_dtype)
    whh_p = jnp.pad(w_hh_t, ((0, 0), (0, H_p - H))).astype(compute_dtype)
    bias = params["b_ih"] + params["b_hh"]          # exact (both are zero-init anyway)
    b_p = jnp.pad(bias, (0, H_p - H)).reshape(1, H_p).astype(jnp.float32)
    return {"wih_p": wih_p, "whh_p": whh_p, "b_p": b_p}


def rnn_cell_forward(prepared, x, h):
    """Module forward: x (bs, N, c), h (bs, N, H) -> new h (bs, N, H)."""
    assert x.ndim == 3, "dim of input for RNNCell should be 3"
    assert h.ndim == 3, "dim of input for RNNCell should be 3"
    output_shape = h.shape
    x2 = x.reshape(-1, x.shape[-1])
    h2 = h.reshape(-1, h.shape[-1])
    h_new = rnn_cell_pallas(x2, h2, prepared["wih_p"], prepared["whh_p"], prepared["b_p"])
    return h_new.reshape(output_shape)


if __name__ == "__main__":
    # Small shapes consistent with the module: x (bs, N, c), h (bs, N, hidden)
    bs, N, input_size, hidden_size = 2, 8, 32, 64

    key = jax.random.PRNGKey(0)
    key, kx, kh = jax.random.split(key, 3)
    x = jax.random.normal(kx, (bs, N, input_size), dtype=jnp.float32)
    h = jax.random.normal(kh, (bs, N, hidden_size), dtype=jnp.float32)

    params = init_rnn_cell_params(key, input_size, hidden_size)

    # Default path: bf16 MXU operands, f32 accumulation / bias / tanh.
    prep_bf16 = prepare_rnn_cell_params(params, compute_dtype=jnp.bfloat16)
    out_bf16 = jax.block_until_ready(rnn_cell_forward(prep_bf16, x, h))

    # Exact-parity path: f32 operands end to end.
    prep_f32 = prepare_rnn_cell_params(params, compute_dtype=jnp.float32)
    out_f32 = jax.block_until_ready(rnn_cell_forward(prep_f32, x, h))

    # Pure-JAX references.
    x2 = x.reshape(-1, input_size)
    h2 = h.reshape(-1, hidden_size)
    bias = params["b_ih"] + params["b_hh"]
    ref_f32 = jnp.tanh(
        jnp.dot(x2, params["w_ih_t"], precision=jax.lax.Precision.HIGHEST)
        + jnp.dot(h2, params["w_hh_t"], precision=jax.lax.Precision.HIGHEST)
        + bias
    ).reshape(h.shape)

    def bf16_round(a):
        return a.astype(jnp.bfloat16).astype(jnp.float32)

    ref_bf16 = jnp.tanh(
        jnp.dot(bf16_round(x2), bf16_round(params["w_ih_t"]),
                precision=jax.lax.Precision.HIGHEST)
        + jnp.dot(bf16_round(h2), bf16_round(params["w_hh_t"]),
                  precision=jax.lax.Precision.HIGHEST)
        + bias
    ).reshape(h.shape)

    assert out_f32.shape == h.shape and out_bf16.shape == h.shape
    assert bool(jnp.allclose(out_f32, ref_f32, atol=1e-4, rtol=1e-4)), (
        f"f32 path max abs err = {float(jnp.max(jnp.abs(out_f32 - ref_f32)))}"
    )
    assert bool(jnp.allclose(out_bf16, ref_bf16, atol=2e-3, rtol=2e-3)), (
        f"bf16 path max abs err = {float(jnp.max(jnp.abs(out_bf16 - ref_bf16)))}"
    )

    print("KERNEL_OK")
</pallas_src>

<mosaic_0001>
module attributes {stable_mosaic.version = 11 : i64} {
  func.func @_rnn_cell_kernel(%arg0: i32, %arg1: memref<8x32xf32, #tpu.memory_space<vmem>>, %arg2: memref<8x64xf32, #tpu.memory_space<vmem>>, %arg3: memref<32x128xbf16, #tpu.memory_space<vmem>>, %arg4: memref<64x128xbf16, #tpu.memory_space<vmem>>, %arg5: memref<1x128xf32, #tpu.memory_space<vmem>>, %arg6: memref<8x128xf32, #tpu.memory_space<vmem>>) attributes {dimension_semantics = [#tpu.dimension_semantics<parallel>], iteration_bounds = array<i64: 2>, scalar_prefetch = 0 : i64, scratch_operands = 0 : i64, tpu.core_type = #tpu.core_type<tc>, window_params = [{transform_indices = @transform_0, window_bounds = array<i64: 8, 32>}, {transform_indices = @transform_1, window_bounds = array<i64: 8, 64>}, {pipeline_mode = #tpu.pipeline_mode<synchronous>, transform_indices = @transform_2, window_bounds = array<i64: 32, 128>}, {pipeline_mode = #tpu.pipeline_mode<synchronous>, transform_indices = @transform_3, window_bounds = array<i64: 64, 128>}, {pipeline_mode = #tpu.pipeline_mode<synchronous>, transform_indices = @transform_4, window_bounds = array<i64: 1, 128>}, {transform_indices = @transform_5, window_bounds = array<i64: 8, 128>}]} {
    %c0 = arith.constant 0 : index
    %c0_0 = arith.constant 0 : index
    %0 = vector.load %arg1[%c0, %c0_0] : memref<8x32xf32, #tpu.memory_space<vmem>>, vector<8x32xf32>
    %1 = arith.truncf %0 : vector<8x32xf32> to vector<8x32xbf16>
    %c0_1 = arith.constant 0 : index
    %c0_2 = arith.constant 0 : index
    %2 = vector.load %arg2[%c0_1, %c0_2] : memref<8x64xf32, #tpu.memory_space<vmem>>, vector<8x64xf32>
    %3 = arith.truncf %2 : vector<8x64xf32> to vector<8x64xbf16>
    %c0_3 = arith.constant 0 : index
    %c0_4 = arith.constant 0 : index
    %4 = vector.load %arg3[%c0_3, %c0_4] : memref<32x128xbf16, #tpu.memory_space<vmem>>, vector<32x128xbf16>
    %cst = arith.constant dense<0.000000e+00> : vector<8x128xf32>
    %5 = tpu.matmul %1, %4, %cst {dimension_numbers = #tpu.dot_dimension_numbers<[1], [0], [0], [1], [0, 0, 1, 1], [], []>} : vector<8x32xbf16>, vector<32x128xbf16>, vector<8x128xf32> -> vector<8x128xf32>
    %c0_5 = arith.constant 0 : index
    %c0_6 = arith.constant 0 : index
    %6 = vector.load %arg4[%c0_5, %c0_6] : memref<64x128xbf16, #tpu.memory_space<vmem>>, vector<64x128xbf16>
    %cst_7 = arith.constant dense<0.000000e+00> : vector<8x128xf32>
    %7 = tpu.matmul %3, %6, %cst_7 {dimension_numbers = #tpu.dot_dimension_numbers<[1], [0], [0], [1], [0, 0, 1, 1], [], []>} : vector<8x64xbf16>, vector<64x128xbf16>, vector<8x128xf32> -> vector<8x128xf32>
    %8 = arith.addf %5, %7 : vector<8x128xf32>
    %c0_8 = arith.constant 0 : index
    %c0_9 = arith.constant 0 : index
    %9 = vector.load %arg5[%c0_8, %c0_9] : memref<1x128xf32, #tpu.memory_space<vmem>>, vector<1x128xf32>
    %10 = vector.broadcast %9 : vector<1x128xf32> to vector<8x128xf32>
    %11 = arith.addf %8, %10 : vector<8x128xf32>
    %12 = math.tanh %11 : vector<8x128xf32>
    %c0_10 = arith.constant 0 : index
    %c0_11 = arith.constant 0 : index
    %13 = vector.load %arg6[%c0_10, %c0_11] : memref<8x128xf32, #tpu.memory_space<vmem>>, vector<8x128xf32>
    tpu.vector_store %arg6[%c0_10, %c0_11], %12 {strides = array<i32>} : memref<8x128xf32, #tpu.memory_space<vmem>>, vector<8x128xf32>,
    return
  }
  func.func @transform_0(%arg0: i32) -> (i32, i32) {
    %c0_i32 = arith.constant 0 : i32
    %c0_i32_0 = arith.constant 0 : i32
    return %arg0, %c0_i32 : i32, i32
  }
  func.func @transform_1(%arg0: i32) -> (i32, i32) {
    %c0_i32 = arith.constant 0 : i32
    %c0_i32_0 = arith.constant 0 : i32
    return %arg0, %c0_i32 : i32, i32
  }
  func.func @transform_2(%arg0: i32) -> (i32, i32) {
    %c0_i32 = arith.constant 0 : i32
    %c0_i32_0 = arith.constant 0 : i32
    %c0_i32_1 = arith.constant 0 : i32
    return %c0_i32, %c0_i32_0 : i32, i32
  }
  func.func @transform_3(%arg0: i32) -> (i32, i32) {
    %c0_i32 = arith.constant 0 : i32
    %c0_i32_0 = arith.constant 0 : i32
    %c0_i32_1 = arith.constant 0 : i32
    return %c0_i32, %c0_i32_0 : i32, i32
  }
  func.func @transform_4(%arg0: i32) -> (i32, i32) {
    %c0_i32 = arith.constant 0 : i32
    %c0_i32_0 = arith.constant 0 : i32
    %c0_i32_1 = arith.constant 0 : i32
    return %c0_i32, %c0_i32_0 : i32, i32
  }
  func.func @transform_5(%arg0: i32) -> (i32, i32) {
    %c0_i32 = arith.constant 0 : i32
    %c0_i32_0 = arith.constant 0 : i32
    return %arg0, %c0_i32 : i32, i32
  }
}

</mosaic_0001>

<bundles_post_ra>
// kernel: tpu_custom_call.1
= control target key start
LH: loop header
LB: loop body
LE: loop exit
PB: predicated region body
PF: predicated region fallthrough
CT: control target
= control target key end

     0   :  { %s1082_s0 = inlined_call_operand.hbm [shape: f32[16,32], index: 0, kind: input, shape index: {}]   ;;  %s1083_s1 = inlined_call_operand.hbm [shape: f32[16,64], index: 1, kind: input, shape index: {}]   ;;  %s1084_s2 = inlined_call_operand.hbm [shape: bf16[32,128], index: 2, kind: input, shape index: {}]   ;;  %s1085_s3 = inlined_call_operand.hbm [shape: bf16[64,128], index: 3, kind: input, shape index: {}]   ;;  %s1086_s4 = inlined_call_operand.vmem [shape: f32[1,128], index: 4, kind: input, shape index: {}]   ;;  %s1087_s5 = inlined_call_operand.hbm [shape: f32[16,128], index: 5, kind: output, shape index: {}]  }
   0x1   :  { %1089 = sst [smem:[#allocation18_spill]] %s1084_s2 }
   0x2   :  { %1090 = sst [smem:[#allocation19_spill]] %s1085_s3 }
   0x3   :  { %10 = vsyncpa [#allocation3], 0 }
   0x4   :  { %12 = vsyncpa [#allocation3 + $0x1], 0 }
   0x5   :  { %13 = vsyncpa [#allocation6], 0 }
   0x6   :  { %15 = vsyncpa [#allocation6 + $0x1], 0 }
   0x7   :  { %16 = vsyncpa [#allocation9], 0 }
   0x8   :  { %17 = vsyncpa [#allocation4], 0 }
   0x9   :  { %19 = vsyncpa [#allocation4 + $0x1], 0  ;;  %s898_s18 = smov 0   ;;  %s900_s19 = smov 0  }
   0xa   :  { %s902_s20 = smov 0   ;;  %s904_s21 = smov 0  }
   0xb LB: > { %1091 = sst [smem:[#allocation16_spill]] %s858_s20  ;;  %s922_s25 = sadd.s32 4294967295, %s862_s21   ;;  %s862_s21 = sphi %s904_s21, %s1106_s21   ;;  %s858_s20 = sphi %s902_s20, %s1103_s20   ;;  %s854_s19 = sphi %s900_s19, %s1105_s19   ;;  %s850_s18 = sphi %s898_s18, %s1104_s18  }
   0xc   : > { %s1092_s2 = sld [smem:[#allocation18_spill]]  ;;  %p537_p0 = scmp.ge.s32.totalorder %s862_s21, 1 }
   0xd   : > { %p46_p1 = scmp.eq.s32.totalorder %s922_s25, 0  ;;  %p171_p2 = scmp.lt.s32.totalorder %s862_s21, 3 }
   0xe   : > { %s864_s27 = smov [#allocation7]   ;;  %s1094_s3 = sld [smem:[#allocation19_spill]] }
   0xf   : > { %p927_p3 = pnand %p537_p0, %p171_p2  ;;  %s184_s28 = sshll.u32 %s864_s27, 4  ;;  %s185_s28 = int_to_ptr.vmem [resolvable:$true] %s184_s28 }
  0x10   : > { %s865_s7 = smov [#allocation8]   ;;  %s866_s9 = smov 64  }
  0x11   : > { %p601_p4 = pneg %p927_p3  ;;  %s198_s8 = sshll.u32 %s865_s7, 4  ;;  %s199_s8 = int_to_ptr.vmem [resolvable:$true] %s198_s8 }
  0x12   : > { %s182_s24 = sshll.u32 %s1092_s2, 4  ;;  %s867_s10 = smov 4   ;;  %s183_s24 = int_to_ptr.hbm [resolvable:$true] %s182_s24 }
  0x13   : > { %p602_p6 = pnand %p601_p4, %p46_p1  ;;  %s536_s11 = sadd.s32 4294967294, %s862_s21  }
  0x14   : > { %s196_s6 = sshll.u32 %s1094_s3, 4  ;;  %s941_s12 = sadd.s32 1, %s862_s21   ;;  %s197_s6 = int_to_ptr.hbm [resolvable:$true] %s196_s6 }
  0x15   : > { %604 = dma.hbm_to_vmem [thread:$0]  (!%p602_p6), %s183_s24, 256, %s185_s28, [#allocation6], %s866_s9, %s866_s9, %s867_s10  }
  0x16   : > { %607 = dma.hbm_to_vmem [thread:$0]  (!%p602_p6), %s197_s6, 512, %s199_s8, [#allocation9], %s866_s9, %s866_s9, %s867_s10  }
  0x17   : > { %s29_s13 = ssub.s32 %s862_s21, %s941_s12  ;;  %s32_s14 = sadd.s32 1, %s858_s20 }
  0x18   : > { %p30_p7 = scmp.eq.s32.totalorder %s29_s13, 0  ;;  %p39_p8 = scmp.ne.s32.totalorder %s858_s20, %s854_s19 }
  0x19   : > { %p40_p9 = scmp.eq.s32.totalorder %s862_s21, 0  ;;  %p45_p10 = scmp.ne.s32.totalorder %s854_s19, %s850_s18 }
  0x1a   : > { %s952_s15 = scalar_select %p30_p7, %s858_s20, %s32_s14  }
  0x1b   : > { %p954_p11 = por %p40_p9, %p39_p8  ;;  %p960_p12 = por %p46_p1, %p45_p10 }
  0x1c   : > { %1095 = sst [smem:[#allocation17_spill]] %s952_s15  ;;  %p158_p13 = scmp.eq.s32.totalorder %s922_s25, 1 }
  0x1d   : > { %p164_p0 = scmp.eq.s32.totalorder %s536_s11, 1  ;;  %p621_p2 = scmp.lt.s32.totalorder %s862_s21, 2 }
  0x1e   : > { %s215_s22 = sand.u32 1, %s858_s20   ;;  %p967_p4 = por %p158_p13, %p39_p8 }
  0x1f   : > { %p971_p6 = por %p164_p0, %p45_p10  ;;  %s975_s27 = sshll.u32 %s215_s22, 3 }
  0x20   : > { %s542_s28 = sshll.u32 %s862_s21, 3  ;;  %s219_s7 = scalar_lea.vmem [#allocation2], %s975_s27 }
  0x21   : > { %s223_s6 = scalar_lea.hbm %s1082_s0, %s542_s28  ;;  %s227_s8 = sshll.u32 %s219_s7, 4  ;;  %s228_s8 = int_to_ptr.vmem [resolvable:$true] %s227_s8 }
  0x22   : > { %s225_s9 = sshll.u32 %s223_s6, 4  ;;  %p984_p7 = pnand %p621_p2, %p954_p11  ;;  %s226_s9 = int_to_ptr.hbm [resolvable:$true] %s225_s9 }
  0x23   : > { %s242_s14 = scalar_lea.hbm %s1083_s1, %s542_s28  ;;  %s234_s2 = sand.u32 1, %s862_s21  }
  0x24   : > { %s216_s3 = scalar_lea.sflag [#allocation3], %s215_s22  ;;  %s724_s29 = sshra.s32 %s226_s9, 4  ;;  %s725_s29 = int_to_ptr.hbm [resolvable:$true] %s724_s29 }
  0x25   : > { %s726_s30 = scalar_lea.hbm %s725_s29, 8  ;;  %p728_p9 = pneg %p984_p7 }
  0x26   : > { %p727_p8 = scmp.ne.s32.totalorder %s725_s29, %s726_s30  ;;  %s731_s7 = scalar_lea.hbm %s1082_s0, 16 }
  0x27   : > { %p732_p13 = scmp.lt.s32.totalorder %s725_s29, %s1082_s0  ;;  %p733_p0 = scmp.lt.s32.totalorder %s731_s7, %s726_s30 }
  0x28   : > { %p729_p10 = pnand %p728_p9, %p727_p8 }
  0x29   : > { %p734_p2 = por %p733_p0, %p732_p13 }
  0x2a   : > { %p730_p11 = pneg %p729_p10 }
  0x2c   : > { %p735_p5 = pnand %p734_p2, %p730_p11 }
  0x2e   : > { %738 = shalt.err (!%p735_p5)
}
  0x2f   : > { %611 = dma.hbm_to_vmem [thread:$0]  (!%p984_p7), %s226_s9, 128, %s228_s8, %s216_s3  }
  0x30   : > { %s244_s22 = sshll.u32 %s242_s14, 4  ;;  %s238_s28 = scalar_lea.vmem [#allocation5], %s975_s27  ;;  %s245_s22 = int_to_ptr.hbm [resolvable:$true] %s244_s22 }
  0x31   : > { %s246_s15 = sshll.u32 %s238_s28, 4  ;;  %s235_s16 = scalar_lea.sflag [#allocation6], %s234_s2  ;;  %s247_s15 = int_to_ptr.vmem [resolvable:$true] %s246_s15 }
  0x32   : > { %s754_s6 = sshra.s32 %s245_s22, 4  ;;  %s761_s7 = scalar_lea.hbm %s1083_s1, 16  ;;  %s755_s6 = int_to_ptr.hbm [resolvable:$true] %s754_s6 }
  0x33   : > { %s756_s20 = scalar_lea.hbm %s755_s6, 8  ;;  %p762_p5 = scmp.lt.s32.totalorder %s755_s6, %s1083_s1 }
  0x34   : > { %p757_p8 = scmp.ne.s32.totalorder %s755_s6, %s756_s20  ;;  %p763_p13 = scmp.lt.s32.totalorder %s761_s7, %s756_s20 }
  0x36   : > { %p759_p10 = pnand %p757_p8, %p728_p9  ;;  %p764_p0 = por %p763_p13, %p762_p5 }
  0x38   : > { %p760_p11 = pneg %p759_p10 }
  0x3a   : > { %p765_p2 = pnand %p764_p0, %p760_p11 }
  0x3c   : > { %768 = shalt.err (!%p765_p2)
}
  0x3d   : > { %614 = dma.hbm_to_vmem [thread:$0]  (!%p984_p7), %s245_s22, 128, %s247_s15, %s235_s16  }
  0x3e   : > { %255 = sbr.rel (%p927_p3) target bundleno = 231 (0xe7), region = 40  ;;  %s1020_s2 = sand.u32 (!%p927_p3), 1, %s854_s19  }
  0x3f   : > { %s1023_s27 = sshll.u32 (!%p927_p3), %s1020_s2, 3  ;;  %s258_s8 = scalar_lea.sflag (!%p927_p3), [#allocation3], %s1020_s2 }
  0x40   : > { %s261_s20 = scalar_lea.vmem (!%p927_p3), [#allocation2], %s1023_s27 }
  0x43   : > { %829 = dma.done.wait (%p960_p12), %s258_s8, 128  }
  0x44   : > { %831 = vsyncadd (%p960_p12), %s258_s8, 4294967168  ;;  %s267_s26 = sand.u32 1, %s922_s25   ;;  %s271_s9 = scalar_lea.vmem [#allocation5], %s1023_s27 }
  0x45   : > { %s268_s15 = scalar_lea.sflag [#allocation6], %s267_s26 }
  0x46   : > { %833 = dma.done.wait (%p960_p12), %s268_s15, 128  }
  0x47   : > { %835 = vsyncadd (%p960_p12), %s268_s15, 4294967168 }
  0x48   : > { %837 = dma.done.wait (%p46_p1), [#allocation6], 256  }
  0x49   : > { %839 = vsyncadd (%p46_p1), [#allocation6], 4294967040 }
  0x4a   : > { %841 = dma.done.wait (%p46_p1), [#allocation9], 512  }
  0x4b   : > { %843 = vsyncadd (%p46_p1), [#allocation9], 4294966784  ;;  %v586_v0 = vld [vmem:[#allocation8 + $0x18] sm:$0xff]  ;;  %v585_v2 = vld [vmem:[#allocation8 + $0x10] sm:$0xff]  ;;  %vm384_vm0 = vcmask 261120   ;;  %vm355_vm1 = vcmask 523264  }
  0x4c   : > { %v582_v1 = vld [vmem:[#allocation7 + $0x8] sm:$0xff]  ;;  %363 = vmatpush.bf16.msra.mxu0 %v586_v0  ;;  %v581_v3 = vld [vmem:[#allocation7] sm:$0xff]  ;;  %v584_v6 = vld [vmem:[#allocation8 + $0x8] sm:$0xff]  ;;  %s578_s14 = sshll.u32 %s922_s25, 3  ;;  %s313_s16 = scalar_lea.vmem [#allocation10], %s1023_s27 }
  0x4d   : > { %394 = vmatpush.bf16.msra.mxu1 %v582_v1  ;;  %v315_v4 = vld [vmem:[%s261_s20] sm:$0xff]  ;;  %v583_v7 = vld [vmem:[#allocation8] sm:$0xff]  ;;  %s419_s28 = scalar_lea.hbm %s1087_s5, %s578_s14  ;;  %s421_s6 = sshll.u32 %s313_s16, 4  ;;  %s422_s6 = int_to_ptr.vmem [resolvable:$true] %s421_s6 }
  0x4e   : > { %v316_v5 = vpack.c.bf16 %v315_v4, %v315_v4  ;;  %v317_v8 = vld [vmem:[%s271_s9] sm:$0xff]  ;;  %v661_v11 = vld [vmem:[%s1086_s4] ss:$0 sm:$0xff]  ;;  %s423_s29 = sshll.u32 %s419_s28, 4  ;;  %s409_s30 = scalar_lea.sflag [#allocation4], %s1020_s2  ;;  %s424_s29 = int_to_ptr.hbm [resolvable:$true] %s423_s29 }
  0x4f   : > { %v318_v9 = vpack.c.bf16 %v317_v8, %v317_v8  ;;  %s798_s7 = sshra.s32 %s424_s29, 4  ;;  %s804_s8 = scalar_lea.hbm %s1087_s5, 16  ;;  %s799_s7 = int_to_ptr.hbm [resolvable:$true] %s798_s7 }
  0x50   : > { %364 = vmatpush.bf16.msra.mxu0 %v585_v2  ;;  %s800_s11 = scalar_lea.hbm %s799_s7, 8  ;;  %p805_p7 = scmp.lt.s32.totalorder %s799_s7, %s1087_s5 }
  0x51   : > { %395 = vmatpush.bf16.msra.mxu1 %v581_v3  ;;  %p801_p1 = scmp.ne.s32.totalorder %s799_s7, %s800_s11  ;;  %p806_p9 = scmp.lt.s32.totalorder %s804_s8, %s800_s11 }
  0x53   : > { %p802_p3 = pnand %p801_p1, %p967_p4  ;;  %p807_p8 = por %p806_p9, %p805_p7 }
  0x54   : > { %576 = vmatmul.msk.bf16.vlgmr.msra.gmra.mxu1 %vm384_vm0, %v316_v5  ;;  %365 = vmatpush.bf16.msra.mxu0 %v584_v6 }
  0x55   : > { %p803_p12 = pneg %p802_p3 }
  0x57   : > { %p808_p10 = pnand %p807_p8, %p803_p12 }
  0x58   : > { %366 = vmatpush.bf16.msra.mxu0 %v583_v7 }
  0x5b   : > { %567 = vmatmul.msk.bf16.vlgmr.msra.gmra.mxu0 %vm355_vm1, %v318_v9 }
  0xd1   : > { %v397_v10 = vpop.f32.mrf.mxu1 }
  0xd8   : > { %v368_v12 = vpop.f32.mrf.mxu0 }
  0xd9   : > { %v399_v13 = vpop.f32.mrf.mxu1  ;;  %v398_v14 = vadd.f32 %v397_v10, %v368_v12 }
  0xdb   : > { %v405_v15 = vadd.f32 %v661_v11, %v398_v14 }
  0xdd   : > { %662 = vtanh.f32 %v405_v15 }
  0xe0   : > { %v370_v16 = vpop.f32.mrf.mxu0 }
  0xe3   : > { %v663_v17 = vpop.eup %662 }
  0xe4   : > { %407 = vst [vmem:[%s313_s16] sm:$0xff] %v663_v17 }
  0xe5   : > { %811 = shalt.err (!%p808_p10)
}
  0xe6   : > { %599 = dma.vmem_to_hbm [thread:$0]  (%p967_p4), %s422_s6, 128, %s424_s29, %s409_s30  }
  0xe7 PF: > { %s435_s2 = sand.u32 1, %s850_s18   ;;  %p1101_p11 = scmp.ge.s32.totalorder %s862_s21, 2 }
  0xe8   : > { %s436_s26 = scalar_lea.sflag [#allocation4], %s435_s2 }
  0xe9   : > { %p616_p5 = pnand %p1101_p11, %p971_p6 }
  0xeb   : > { %p617_p13 = pneg %p616_p5 }
  0xed   : > { %845 = dma.done.wait (%p617_p13), %s436_s26, 128  }
  0xee   : > { %847 = vsyncadd (%p617_p13), %s436_s26, 4294967168  ;;  %s1102_s15 = sld [smem:[#allocation16_spill]]  ;;  %p22_p0 = scmp.ge.s32.totalorder %s941_s12, 4  }
  0xef   : > { %s1103_s20 = sld [smem:[#allocation17_spill]]  ;;  %s1104_s18 = smov %s854_s19 }
  0xf0   : > { %s1106_s21 = smov %s941_s12  ;;  %24 = sbr.rel (!%p22_p0) target bundleno = 11 (0xb), region = 106 }
  0xf4   : > { %s1105_s19 = smov %s1102_s15 }
  0xf5   :  { %442 = vsyncpa [#allocation3], 1 }
  0xf6   :  { %444 = vsyncpa [#allocation3 + $0x1], 1 }
  0xf7   :  { %445 = vsyncpa [#allocation6], 1 }
  0xf8   :  { %447 = vsyncpa [#allocation6 + $0x1], 1 }
  0xf9   :  { %448 = vsyncpa [#allocation9], 1 }
  0xfa   :  { %449 = vsyncpa [#allocation4], 1 }
  0xfb   :  { %451 = vsyncpa [#allocation4 + $0x1], 1 }

</bundles_post_ra>
